<compile_context>
chip_gen: v7x
topology: tpu7x:2x2x1
jax: 0.10.0
libtpu: 0.0.40
codegen_flags: <defaults>
</compile_context>

<pallas_src>
import functools

import jax
import jax.numpy as jnp
import numpy as np
from jax.experimental import pallas as pl
from jax.experimental.pallas import tpu as pltpu


def _round_up(n: int, m: int) -> int:
    return ((n + m - 1) // m) * m


def _largest_divisor_leq(n: int, cap: int) -> int:
    cap = max(1, min(n, cap))
    for d in range(cap, 0, -1):
        if n % d == 0:
            return d
    return 1


def _vmem_capacity_bytes() -> int:
    try:
        return int(pltpu.get_tpu_info().vmem_capacity_bytes)
    except Exception:
        return 64 * 1024 * 1024  # conservative (v7x-sized) fallback


# ---------------------------------------------------------------------------
# Path A: fused single-pass kernel (whole (C, HW) slab per image in VMEM).
# ---------------------------------------------------------------------------
def _ca_fused_kernel(x_ref, w1_ref, b1_ref, w2_ref, b2_ref, o_ref, *, inv_hw):
    # x_ref block: (bt, C, HW); bt is a small static batch-pack factor (<= 8).
    bt = x_ref.shape[0]
    for b in range(bt):  # static unroll
        # Global average pool in f32.  The ref is indexed directly in each expression so
        # the (C, HW) slab is not held live as a bound value across both uses.
        gap = jnp.sum(x_ref[b].astype(jnp.float32), axis=-1, keepdims=True) * inv_hw  # (C,1)
        # Squeeze (1x1 conv) + ReLU.  The pooled vector stays a (C, 1) column on purpose:
        # it comes out of the lane-reduction sublane-dense and is consumed by the rescale
        # sublane-dense, so no lane<->sublane relayout is needed; the two tiny matmuls are
        # negligible in a mem-bound kernel.
        h = jnp.dot(w1_ref[...], gap, preferred_element_type=jnp.float32) + b1_ref[...]
        h = jnp.maximum(h, 0.0)
        # Excite (1x1 conv) + sigmoid.
        s = jnp.dot(w2_ref[...], h, preferred_element_type=jnp.float32) + b2_ref[...]
        s = jax.nn.sigmoid(s)                                                          # (C,1)
        # Rescale in the NATIVE dtype (no full-tile f32 temporary).
        o_ref[b] = x_ref[b] * s.astype(o_ref.dtype)


# ---------------------------------------------------------------------------
# Path B: two-phase — GAP-reduce kernel + XLA MLP + scale kernel.
# ---------------------------------------------------------------------------
def _gap_kernel(x_ref, gsum_ref, *, hw, hw_tile, need_mask):
    # Accumulate spatial sums over the HW-tile ("arbitrary", last) grid axis.
    @pl.when(pl.program_id(1) == 0)
    def _():
        gsum_ref[...] = jnp.zeros_like(gsum_ref)

    xv = x_ref[...].astype(jnp.float32)
    if need_mask:
        # Ragged tail: the last HW block extends past HW; its OOB lanes hold unspecified
        # VMEM contents, so select-zero them before the reduction (where, not multiply,
        # so NaN/Inf garbage cannot leak through).
        lane = jax.lax.broadcasted_iota(jnp.int32, xv.shape, xv.ndim - 1)
        pos = pl.program_id(1) * hw_tile + lane
        xv = jnp.where(pos < hw, xv, 0.0)
    gsum_ref[...] += jnp.sum(xv, axis=-1, keepdims=True)


def _scale_kernel(x_ref, s_ref, o_ref):
    # Pure bandwidth: native-dtype multiply with the lane-broadcast (bt, C, 1) scales.
    # OOB lanes of the boundary block compute garbage*scale but are never written back.
    o_ref[...] = x_ref[...] * s_ref[...]


def channel_attention(
    x, w1, b1, w2, b2, *,
    path="auto",                 # "auto" | "fused" | "two_phase"
    max_lane_tile=2048,          # lane-tile cap for the two-phase path (multiple of 128)
    target_block_bytes=None,     # None -> generation-aware default
    fused_vmem_budget=None,      # None -> generation-aware default
    vmem_limit_bytes=None,       # None -> generation-aware default
    alias_input=False,           # alias x to the output (caller must not need x afterward)
):
    """x: (B, C, H, W) NCHW.  w1: (Cr, C), b1: (Cr,), w2: (C, Cr), b2: (C,)."""
    B, C, H, W = x.shape
    Cr = w1.shape[0]
    HW = H * W
    isz = x.dtype.itemsize
    wsz = jnp.dtype(w1.dtype).itemsize
    x_flat = x.reshape(B, C, HW)   # contiguous reshape: no data movement

    # ---- generation-aware VMEM / block-size knobs -------------------------------------
    phys_vmem = _vmem_capacity_bytes()
    if vmem_limit_bytes is None:
        vmem_limit_bytes = (phys_vmem * 7) // 8            # 112 MiB (v5e/v6e) / 56 MiB (v7x)
    if fused_vmem_budget is None:
        fused_vmem_budget = (vmem_limit_bytes * 3) // 4     # ~84 MiB / ~42 MiB
    if target_block_bytes is None:
        target_block_bytes = (4 if phys_vmem >= 96 * 1024 * 1024 else 2) * 1024 * 1024

    # ---- fused-path VMEM accounting (per image), incl. weight/bias double buffers ------
    hw_lanes = _round_up(HW, 128)          # in-VMEM lane padding (not HBM traffic)
    c_sub = _round_up(C, 8)
    slab_bytes = c_sub * hw_lanes * isz                      # one (C, HW) block in VMEM
    per_img_bytes = 4 * slab_bytes + c_sub * hw_lanes * 4    # 2x in + 2x out bufs + f32 GAP temp
    weights_bytes = 2 * wsz * (                              # double-buffered block-invariant operands
        _round_up(Cr, 8) * _round_up(C, 128)
        + _round_up(C, 8) * _round_up(Cr, 128)
        + _round_up(Cr, 8) * 128
        + _round_up(C, 8) * 128)

    if path == "auto":
        use_fused = per_img_bytes + weights_bytes <= fused_vmem_budget
    else:
        use_fused = path == "fused"

    if use_fused:
        # >= 4 grid steps when B allows (2 per v7x TensorCore -> pipelined DMA), else >= 2.
        steps_target = 4 if B >= 4 else (2 if B >= 2 else 1)
        bt_cap = min(
            8,                                                               # static-unroll cap
            max(1, target_block_bytes // max(1, C * HW * isz)),              # block-size target
            max(1, (fused_vmem_budget - weights_bytes) // max(1, per_img_bytes)),
            max(1, B // steps_target),
        )
        bt = _largest_divisor_leq(B, bt_cap)

        out_flat = pl.pallas_call(
            functools.partial(_ca_fused_kernel, inv_hw=1.0 / HW),
            out_shape=jax.ShapeDtypeStruct((B, C, HW), x.dtype),
            grid_spec=pltpu.PrefetchScalarGridSpec(
                num_scalar_prefetch=0,
                grid=(B // bt,),
                in_specs=[
                    # Full-extent (C, HW) trailing dims: satisfies the (8,128) rule via the
                    # "equal to full array dims" exception, so no wrapper pad/slice needed.
                    pl.BlockSpec((bt, C, HW), lambda i: (i, 0, 0)),   # x
                    pl.BlockSpec((Cr, C), lambda i: (0, 0)),          # w1 (block-invariant)
                    pl.BlockSpec((Cr, 1), lambda i: (0, 0)),          # b1
                    pl.BlockSpec((C, Cr), lambda i: (0, 0)),          # w2
                    pl.BlockSpec((C, 1), lambda i: (0, 0)),           # b2
                ],
                out_specs=pl.BlockSpec((bt, C, HW), lambda i: (i, 0, 0)),
            ),
            compiler_params=pltpu.CompilerParams(
                dimension_semantics=("parallel",),
                vmem_limit_bytes=vmem_limit_bytes,
            ),
            cost_estimate=pl.CostEstimate(
                flops=3 * B * C * HW,
                transcendentals=B * (C + Cr),
                bytes_accessed=2 * B * C * HW * isz,
            ),
            input_output_aliases=({0: 0} if alias_input else {}),
        )(x_flat, w1, b1.reshape(Cr, 1), w2, b2.reshape(C, 1))
    else:
        # Lane tile: multiple of 128, within the per-step block-size target; the grid uses
        # cdiv so the array itself is never rounded up (no padded HBM traffic).
        lanes_budget = max(128, ((target_block_bytes // max(1, C * isz)) // 128) * 128)
        hw_tile = max(128, min(hw_lanes, lanes_budget, (max_lane_tile // 128) * 128))
        n_hw = pl.cdiv(HW, hw_tile)
        need_mask = (HW % hw_tile) != 0

        bt_cap = max(1, target_block_bytes // max(1, C * hw_tile * isz))
        if B >= 2:
            bt_cap = min(bt_cap, B // 2)   # always keep >= 2 batch steps (both v7x cores)
        bt = _largest_divisor_leq(B, bt_cap)

        # Phase 1: global-average-pool partial sums; HW is the last ("arbitrary") axis.
        gsum = pl.pallas_call(
            functools.partial(_gap_kernel, hw=HW, hw_tile=hw_tile, need_mask=need_mask),
            out_shape=jax.ShapeDtypeStruct((B, C, 1), jnp.float32),
            grid_spec=pltpu.PrefetchScalarGridSpec(
                num_scalar_prefetch=0,
                grid=(B // bt, n_hw),
                in_specs=[pl.BlockSpec((bt, C, hw_tile), lambda i, h: (i, 0, h))],
                out_specs=pl.BlockSpec((bt, C, 1), lambda i, h: (i, 0, 0)),
            ),
            compiler_params=pltpu.CompilerParams(
                dimension_semantics=("parallel", "arbitrary"),
                vmem_limit_bytes=vmem_limit_bytes,
            ),
            cost_estimate=pl.CostEstimate(
                flops=B * C * HW,
                transcendentals=0,
                bytes_accessed=B * C * HW * isz + B * C * 4,
            ),
        )(x_flat)

        # Tiny squeeze/excite MLP for ALL batches as lane-dense batched XLA matmuls
        # (no degenerate N=1 MXU pushes inside the kernel).
        gap = gsum[:, :, 0] * (1.0 / HW)                                               # (B, C) f32
        hmid = jnp.maximum(gap @ w1.astype(jnp.float32).T + b1.astype(jnp.float32), 0.0)
        s = jax.nn.sigmoid(hmid @ w2.astype(jnp.float32).T + b2.astype(jnp.float32))   # (B, C) f32
        s3 = s.astype(x.dtype).reshape(B, C, 1)

        # Phase 2: channel-wise rescale; both grid axes parallel.
        out_flat = pl.pallas_call(
            _scale_kernel,
            out_shape=jax.ShapeDtypeStruct((B, C, HW), x.dtype),
            grid_spec=pltpu.PrefetchScalarGridSpec(
                num_scalar_prefetch=0,
                grid=(B // bt, n_hw),
                in_specs=[
                    pl.BlockSpec((bt, C, hw_tile), lambda i, h: (i, 0, h)),
                    pl.BlockSpec((bt, C, 1), lambda i, h: (i, 0, 0)),
                ],
                out_specs=pl.BlockSpec((bt, C, hw_tile), lambda i, h: (i, 0, h)),
            ),
            compiler_params=pltpu.CompilerParams(
                dimension_semantics=("parallel", "parallel"),
                vmem_limit_bytes=vmem_limit_bytes,
            ),
            cost_estimate=pl.CostEstimate(
                flops=B * C * HW,
                transcendentals=0,
                bytes_accessed=2 * B * C * HW * isz + B * C * isz,
            ),
            input_output_aliases=({0: 0} if alias_input else {}),
        )(x_flat, s3)

    return out_flat.reshape(B, C, H, W)


def channel_attention_ref(x, w1, b1, w2, b2):
    """Pure-JAX reference of the PyTorch forward (multiplication=True)."""
    gap = jnp.mean(x, axis=(2, 3))                                     # (B, C)
    h = jnp.maximum(gap @ w1.T + b1, 0.0)                              # (B, Cr)
    s = jax.nn.sigmoid(h @ w2.T + b2)                                  # (B, C)
    return x * s[:, :, None, None]


if __name__ == "__main__":
    def run_case(key, B, C, H, W, reduction_ratio, x_dtype=jnp.float32, tol=2e-3, **kw):
        Cr = max(1, C // reduction_ratio)
        kx, kw1, kb1, kw2, kb2 = jax.random.split(key, 5)
        x = jax.random.normal(kx, (B, C, H, W), dtype=jnp.float32).astype(x_dtype)
        # 1x1 conv weights Conv2d(C, Cr, 1) -> (Cr, C, 1, 1); keep the (Cr, C) matrix.
        w1 = jax.random.normal(kw1, (Cr, C), dtype=jnp.float32) * 0.5
        b1 = jax.random.normal(kb1, (Cr,), dtype=jnp.float32) * 0.1
        w2 = jax.random.normal(kw2, (C, Cr), dtype=jnp.float32) * 0.5
        b2 = jax.random.normal(kb2, (C,), dtype=jnp.float32) * 0.1

        # Reference in f32 (tolerance covers MXU default-precision 1x1-conv matmuls and,
        # for bf16 inputs, the native-dtype rescale).
        ref = channel_attention_ref(x.astype(jnp.float32), w1, b1, w2, b2)
        for p in ("fused", "two_phase", "auto"):
            out = channel_attention(x, w1, b1, w2, b2, path=p, **kw)
            out = jax.block_until_ready(out)
            np.testing.assert_allclose(np.asarray(out, dtype=np.float32), np.asarray(ref),
                                        rtol=tol, atol=tol)

    key = jax.random.PRNGKey(0)
    k1, k2, k3 = jax.random.split(key, 3)
    # Primary small shape implied by the module (HW a multiple of 128).
    run_case(k1, B=2, C=4, H=16, W=16, reduction_ratio=4)
    # Non-128-aligned HW: exercises the full-extent fused block (no pad/slice) and the
    # two-phase ragged-tail mask (max_lane_tile=128 -> 2 HW tiles, last one partial).
    run_case(k2, B=4, C=8, H=11, W=13, reduction_ratio=4, max_lane_tile=128)
    # bf16 activation tolerance check (scale cast + native-dtype rescale), tiny 7x7 map.
    run_case(k3, B=2, C=8, H=7, W=7, reduction_ratio=4, x_dtype=jnp.bfloat16, tol=5e-2)

    print("KERNEL_OK")
</pallas_src>

<mosaic_0001>
module attributes {stable_mosaic.version = 11 : i64} {
  func.func @_ca_fused_kernel(%arg0: i32, %arg1: memref<1x4x256xf32, #tpu.memory_space<vmem>>, %arg2: memref<1x4xf32, #tpu.memory_space<vmem>>, %arg3: memref<1x1xf32, #tpu.memory_space<vmem>>, %arg4: memref<4x1xf32, #tpu.memory_space<vmem>>, %arg5: memref<4x1xf32, #tpu.memory_space<vmem>>, %arg6: memref<1x4x256xf32, #tpu.memory_space<vmem>>) attributes {dimension_semantics = [#tpu.dimension_semantics<parallel>], iteration_bounds = array<i64: 2>, scalar_prefetch = 0 : i64, scratch_operands = 0 : i64, tpu.core_type = #tpu.core_type<tc>, window_params = [{transform_indices = @transform_0, window_bounds = array<i64: 1, 4, 256>}, {pipeline_mode = #tpu.pipeline_mode<synchronous>, transform_indices = @transform_1, window_bounds = array<i64: 1, 4>}, {pipeline_mode = #tpu.pipeline_mode<synchronous>, transform_indices = @transform_2, window_bounds = array<i64: 1, 1>}, {pipeline_mode = #tpu.pipeline_mode<synchronous>, transform_indices = @transform_3, window_bounds = array<i64: 4, 1>}, {pipeline_mode = #tpu.pipeline_mode<synchronous>, transform_indices = @transform_4, window_bounds = array<i64: 4, 1>}, {transform_indices = @transform_5, window_bounds = array<i64: 1, 4, 256>}]} {
    %c0 = arith.constant 0 : index
    %c0_0 = arith.constant 0 : index
    %c0_1 = arith.constant 0 : index
    %0 = vector.load %arg1[%c0, %c0_0, %c0_1] : memref<1x4x256xf32, #tpu.memory_space<vmem>>, vector<1x4x256xf32>
    %1 = vector.shape_cast %0 : vector<1x4x256xf32> to vector<4x256xf32>
    %cst = arith.constant dense<0.000000e+00> : vector<4xf32>
    %2 = vector.multi_reduction <add>, %1, %cst [1] : vector<4x256xf32> to vector<4xf32>
    %3 = vector.shape_cast %2 : vector<4xf32> to vector<4x1xf32>
    %cst_2 = arith.constant 3.906250e-03 : f32
    %4 = vector.broadcast %cst_2 : f32 to vector<4x1xf32>
    %5 = arith.mulf %3, %4 : vector<4x1xf32>
    %c0_3 = arith.constant 0 : index
    %c0_4 = arith.constant 0 : index
    %6 = vector.load %arg2[%c0_3, %c0_4] : memref<1x4xf32, #tpu.memory_space<vmem>>, vector<1x4xf32>
    %cst_5 = arith.constant dense<0.000000e+00> : vector<1x1xf32>
    %7 = tpu.matmul %6, %5, %cst_5 {dimension_numbers = #tpu.dot_dimension_numbers<[1], [0], [0], [1], [0, 0, 1, 1], [], []>} : vector<1x4xf32>, vector<4x1xf32>, vector<1x1xf32> -> vector<1x1xf32>
    %c0_6 = arith.constant 0 : index
    %c0_7 = arith.constant 0 : index
    %8 = vector.load %arg3[%c0_6, %c0_7] : memref<1x1xf32, #tpu.memory_space<vmem>>, vector<1x1xf32>
    %9 = arith.addf %7, %8 : vector<1x1xf32>
    %cst_8 = arith.constant 0.000000e+00 : f32
    %10 = vector.broadcast %cst_8 : f32 to vector<1x1xf32>
    %11 = arith.maximumf %9, %10 : vector<1x1xf32>
    %c0_9 = arith.constant 0 : index
    %c0_10 = arith.constant 0 : index
    %12 = vector.load %arg4[%c0_9, %c0_10] : memref<4x1xf32, #tpu.memory_space<vmem>>, vector<4x1xf32>
    %cst_11 = arith.constant dense<0.000000e+00> : vector<4x1xf32>
    %13 = tpu.matmul %12, %11, %cst_11 {dimension_numbers = #tpu.dot_dimension_numbers<[1], [0], [0], [1], [0, 0, 1, 1], [], []>} : vector<4x1xf32>, vector<1x1xf32>, vector<4x1xf32> -> vector<4x1xf32>
    %c0_12 = arith.constant 0 : index
    %c0_13 = arith.constant 0 : index
    %14 = vector.load %arg5[%c0_12, %c0_13] : memref<4x1xf32, #tpu.memory_space<vmem>>, vector<4x1xf32>
    %15 = arith.addf %13, %14 : vector<4x1xf32>
    %16 = arith.negf %15 : vector<4x1xf32>
    %17 = math.exp %16 : vector<4x1xf32>
    %cst_14 = arith.constant 1.000000e+00 : f32
    %18 = vector.broadcast %cst_14 : f32 to vector<4x1xf32>
    %19 = arith.addf %18, %17 : vector<4x1xf32>
    %20 = arith.divf %18, %19 : vector<4x1xf32>
    %c0_15 = arith.constant 0 : index
    %c0_16 = arith.constant 0 : index
    %c0_17 = arith.constant 0 : index
    %21 = vector.load %arg1[%c0_15, %c0_16, %c0_17] : memref<1x4x256xf32, #tpu.memory_space<vmem>>, vector<1x4x256xf32>
    %22 = vector.shape_cast %21 : vector<1x4x256xf32> to vector<4x256xf32>
    %23 = vector.broadcast %20 : vector<4x1xf32> to vector<4x256xf32>
    %24 = arith.mulf %22, %23 : vector<4x256xf32>
    %c0_18 = arith.constant 0 : index
    %c0_19 = arith.constant 0 : index
    %c0_20 = arith.constant 0 : index
    %25 = vector.load %arg6[%c0_18, %c0_19, %c0_20] : memref<1x4x256xf32, #tpu.memory_space<vmem>>, vector<1x4x256xf32>
    %26 = vector.shape_cast %25 : vector<1x4x256xf32> to vector<4x256xf32>
    %27 = vector.shape_cast %24 : vector<4x256xf32> to vector<1x4x256xf32>
    tpu.vector_store %arg6[%c0_18, %c0_19, %c0_20], %27 {strides = array<i32>} : memref<1x4x256xf32, #tpu.memory_space<vmem>>, vector<1x4x256xf32>,
    return
  }
  func.func @transform_0(%arg0: i32) -> (i32, i32, i32) {
    %c0_i32 = arith.constant 0 : i32
    %c0_i32_0 = arith.constant 0 : i32
    %c0_i32_1 = arith.constant 0 : i32
    return %arg0, %c0_i32, %c0_i32_0 : i32, i32, i32
  }
  func.func @transform_1(%arg0: i32) -> (i32, i32) {
    %c0_i32 = arith.constant 0 : i32
    %c0_i32_0 = arith.constant 0 : i32
    %c0_i32_1 = arith.constant 0 : i32
    return %c0_i32, %c0_i32_0 : i32, i32
  }
  func.func @transform_2(%arg0: i32) -> (i32, i32) {
    %c0_i32 = arith.constant 0 : i32
    %c0_i32_0 = arith.constant 0 : i32
    %c0_i32_1 = arith.constant 0 : i32
    return %c0_i32, %c0_i32_0 : i32, i32
  }
  func.func @transform_3(%arg0: i32) -> (i32, i32) {
    %c0_i32 = arith.constant 0 : i32
    %c0_i32_0 = arith.constant 0 : i32
    %c0_i32_1 = arith.constant 0 : i32
    return %c0_i32, %c0_i32_0 : i32, i32
  }
  func.func @transform_4(%arg0: i32) -> (i32, i32) {
    %c0_i32 = arith.constant 0 : i32
    %c0_i32_0 = arith.constant 0 : i32
    %c0_i32_1 = arith.constant 0 : i32
    return %c0_i32, %c0_i32_0 : i32, i32
  }
  func.func @transform_5(%arg0: i32) -> (i32, i32, i32) {
    %c0_i32 = arith.constant 0 : i32
    %c0_i32_0 = arith.constant 0 : i32
    %c0_i32_1 = arith.constant 0 : i32
    return %arg0, %c0_i32, %c0_i32_0 : i32, i32, i32
  }
}

</mosaic_0001>

<bundles_post_ra>
// kernel: tpu_custom_call.1
= control target key start
LH: loop header
LB: loop body
LE: loop exit
PB: predicated region body
PF: predicated region fallthrough
CT: control target
= control target key end

     0   :  { %s924_s0 = inlined_call_operand.hbm [shape: f32[2,4,256], index: 0, kind: input, shape index: {}]   ;;  %s925_s1 = inlined_call_operand.vmem [shape: f32[1,4], index: 1, kind: input, shape index: {}]   ;;  %s926_s2 = inlined_call_operand.<no memory space> [shape: f32[1,1], index: 2, kind: input, shape index: {}]   ;;  %s927_s3 = inlined_call_operand.vmem [shape: f32[4,1], index: 3, kind: input, shape index: {}]   ;;  %s928_s4 = inlined_call_operand.vmem [shape: f32[4,1], index: 4, kind: input, shape index: {}]   ;;  %s929_s5 = inlined_call_operand.hbm [shape: f32[2,4,256], index: 5, kind: output, shape index: {}]  }
   0x1   :  { %v10_v0 = vstv %s926_s2 }
   0x2   :  { %11 = vst [vmem:[#allocation2] sm:$0x1] %v10_v0 }
   0x3   :  { %12 = vsyncpa [#allocation4], 0 }
   0x4   :  { %14 = vsyncpa [#allocation4 + $0x1], 0 }
   0x5   :  { %15 = vsyncpa [#allocation5], 0 }
   0x6   :  { %17 = vsyncpa [#allocation5 + $0x1], 0  ;;  %s747_s20 = smov 0   ;;  %s749_s21 = smov 0  }
   0x7   :  { %s751_s22 = smov 0   ;;  %s753_s23 = smov 0  }
   0x8 LB: > { %s768_s2 = sadd.s32 4294967295, %s706_s23   ;;  %s519_s24 = sadd.s32 4294967294, %s706_s23   ;;  %s706_s23 = sphi %s753_s23, %s944_s23   ;;  %s702_s22 = sphi %s751_s22, %s943_s22   ;;  %s698_s21 = sphi %s749_s21, %s942_s21   ;;  %s694_s20 = sphi %s747_s20, %s941_s20  }
   0x9   : > { %s772_s25 = sadd.s32 1, %s706_s23   ;;  %s30_s26 = sadd.s32 1, %s702_s22 }
   0xa   : > { %s27_s27 = ssub.s32 %s706_s23, %s772_s25  ;;  %p37_p0 = scmp.ne.s32.totalorder %s702_s22, %s698_s21 }
   0xb   : > { %p28_p1 = scmp.eq.s32.totalorder %s27_s27, 0  ;;  %p38_p2 = scmp.eq.s32.totalorder %s706_s23, 0 }
   0xc   : > { %p43_p3 = scmp.ne.s32.totalorder %s698_s21, %s694_s20  ;;  %p44_p4 = scmp.eq.s32.totalorder %s768_s2, 0 }
   0xd   : > { %s784_s28 = scalar_select %p28_p1, %s702_s22, %s30_s26  }
   0xe   : > { %p786_p5 = por %p38_p2, %p37_p0  ;;  %p790_p6 = por %p44_p4, %p43_p3 }
   0xf   : > { %p151_p7 = scmp.eq.s32.totalorder %s768_s2, 1  ;;  %p157_p8 = scmp.eq.s32.totalorder %s519_s24, 1 }
  0x10   : > { %p566_p10 = scmp.lt.s32.totalorder %s706_s23, 2  ;;  %s189_s8 = sand.u32 1, %s702_s22  }
  0x11   : > { %p797_p11 = por %p151_p7, %p37_p0  ;;  %p801_p12 = por %p157_p8, %p43_p3 }
  0x12   : > { %s538_s9 = sshll.u32 %s706_s23, 7  ;;  %s522_s10 = sshll.u32 %s189_s8, 3 }
  0x13   : > { %s933_s6 = scalar_select %p797_p11, 1, 0 }
  0x14   : > { %s934_s7 = scalar_select %p801_p12, 1, 0 }
  0x15   : > { %s810_s13 = scalar_lea.hbm %s924_s0, %s538_s9  ;;  %s193_s14 = scalar_lea.vmem [#allocation3], %s522_s10 }
  0x16   : > { %s201_s15 = sshll.u32 %s193_s14, 4  ;;  %p814_p13 = pnand %p566_p10, %p786_p5  ;;  %s818_s15 = int_to_ptr.vmem [resolvable:$true] %s201_s15 }
  0x17   : > { %s190_s17 = scalar_lea.sflag [#allocation4], %s189_s8  ;;  %s610_s18 = scalar_lea.hbm %s810_s13, 128 }
  0x18   : > { %p611_p2 = scmp.ne.s32.totalorder %s810_s13, %s610_s18  ;;  %p612_p3 = pneg %p814_p13 }
  0x19   : > { %s615_s26 = scalar_lea.hbm %s924_s0, 256  ;;  %p616_p5 = scmp.lt.u32.totalorder %s810_s13, %s924_s0 }
  0x1a   : > { %p613_p4 = pnand %p612_p3, %p611_p2  ;;  %p617_p8 = scmp.lt.u32.totalorder %s615_s26, %s610_s18 }
  0x1b   : > { %p619_p9 = scmp.lt.u32.totalorder %s610_s18, %s810_s13 }
  0x1c   : > { %p614_p7 = pneg %p613_p4  ;;  %p618_p10 = por %p617_p8, %p616_p5 }
  0x1e   : > { %p620_p0 = por %p619_p9, %p618_p10 }
  0x20   : > { %p621_p1 = pnand %p620_p0, %p614_p7 }
  0x22   : > { %624 = shalt.err (!%p621_p1)
}
  0x23   : > { %s625_s8 = scalar_lea.vmem %s818_s15, 128  ;;  %s708_s9 = smov [#allocation3]  }
  0x24   : > { %p626_p2 = scmp.ne.s32.totalorder %s818_s15, %s625_s8  ;;  %s630_s10 = sshll.u32 %s708_s9, 4  ;;  %s631_s10 = int_to_ptr.vmem [resolvable:$false] %s630_s10 }
  0x25   : > { %s632_s11 = scalar_lea.vmem %s631_s10, 256  ;;  %p633_p11 = scmp.lt.s32.totalorder %s818_s15, %s631_s10 }
  0x26   : > { %p628_p4 = pnand %p626_p2, %p612_p3  ;;  %p634_p5 = scmp.lt.s32.totalorder %s632_s11, %s625_s8 }
  0x28   : > { %p629_p12 = pneg %p628_p4  ;;  %p635_p8 = por %p634_p5, %p633_p11 }
  0x2a   : > { %p636_p9 = pnand %p635_p8, %p629_p12 }
  0x2c   : > { %639 = shalt.err (!%p636_p9)
}
  0x2d   : > { %561 = dma.hbm_to_vmem [thread:$0]  (!%p814_p13), %s810_s13, 128, %s818_s15, %s190_s17  }
  0x2e   : > { %p936_p0 = scmp.lt.s32.totalorder %s706_s23, 3  ;;  %p937_p1 = scmp.ge.s32.totalorder %s706_s23, 1 }
  0x30   : > { %p207_p3 = pnand %p937_p1, %p936_p0 }
  0x31   : > { %s852_s12 = sand.u32 (!%p207_p3), 1, %s698_s21  }
  0x32   : > { %210 = sbr.rel (%p207_p3) target bundleno = 812 (0x32c), region = 40  ;;  %s526_s14 = sshll.u32 (!%p207_p3), %s852_s12, 3 }
  0x33   : > { %s213_s18 = scalar_lea.sflag (!%p207_p3), [#allocation4], %s852_s12  ;;  %s216_s16 = scalar_lea.vmem (!%p207_p3), [#allocation3], %s526_s14 }
  0x39   : > { %685 = dma.done.wait (%p790_p6), %s213_s18, 128  }
  0x3a   : > { %687 = vsyncadd (%p790_p6), %s213_s18, 4294967168  ;;  %vm247_vm0 = vcmask 1043456   ;;  %v243_v1 = vld [vmem:[%s216_s16] sm:$0xff]  ;;  %v709_v6 = vmov 0.0   ;;  %vm710_vm1 = vmmov 0   ;;  %vm256_vm2 = vcmask 31744  }
  0x3b   : > { %v245_v2 = vcombine.high %v243_v1, %v243_v1  ;;  %v248_v3 = vsel %vm247_vm0, %v243_v1, 0.0  ;;  %544 = vmatprep.subr.mxu0 %v709_v6  ;;  %549 = vmatprep.subr.mxu1 %v709_v6  ;;  %v254_v9 = vld [vmem:[%s925_s1] sm:$0x1]  ;;  %vm340_vm3 = vcmask 1040384   ;;  %vm336_vm4 = vcmask 7168   ;;  %s539_s26 = sshll.u32 %s768_s2, 7 }
  0x3c   : > { %546 = vmatprep.mubr.msk.f32.mxu0 %vm710_vm1, %v709_v6  ;;  %551 = vmatprep.mubr.msk.f32.mxu1 %vm710_vm1, %v709_v6  ;;  %v255_v10 = vld [vmem:[#allocation2] sm:$0x1]  ;;  %v711_v16 = vmov 0   ;;  %v712_v25 = vmov 839922192   ;;  %v427_v27 = vlaneseq  ;;  %s242_s27 = scalar_lea.vmem [#allocation6], %s526_s14  ;;  %s880_s10 = scalar_lea.hbm %s929_s5, %s539_s26 }
  0x3d   : > { %v249_v4 = vsel %vm247_vm0, %v245_v2, 0.0  ;;  %v334_v15 = vld [vmem:[%s927_s3] sm:$0xf]  ;;  %604 = vset.pattern.permute.xlu0 %v711_v16  ;;  %v425_v26 = vunpack.c.l.s4 %v712_v25  ;;  %s449_s29 = sshll.u32 %s242_s27, 4  ;;  %s435_s11 = scalar_lea.sflag [#allocation5], %s852_s12  ;;  %s882_s29 = int_to_ptr.vmem [resolvable:$true] %s449_s29 }
  0x3e   : > { %v250_v5 = vadd.f32 %v249_v4, %v248_v3  ;;  %v335_v17 = vld [vmem:[%s928_s4] sm:$0xf]  ;;  %v428_v29 = vshrl.u32 %v427_v27, 7  ;;  %s640_s18 = scalar_lea.vmem %s882_s29, 128  ;;  %p938_p11 = scmp.ne.s32.totalorder %s933_s6, 0 }
  0x3f   : > { %v426_v28 = vunpack.c.0.s8 %v425_v26  ;;  %p641_p6 = scmp.ne.s32.totalorder %s882_s29, %s640_s18  ;;  %s713_s2 = smov [#allocation6]  }
  0x40   : > { %251 = vadd.xlane.f32.xlu0 %v250_v5  ;;  %s644_s14 = sshll.u32 %s713_s2, 4  ;;  %s645_s14 = int_to_ptr.vmem [resolvable:$false] %s644_s14 }
  0x41   : > { %v429_v30 = vsub.s32 %v426_v28, %v428_v29  ;;  %p642_p12 = pnand %p641_p6, %p938_p11  ;;  %s646_s16 = scalar_lea.vmem %s645_s14, 256 }
  0x42   : > { %p647_p7 = scmp.lt.s32.totalorder %s882_s29, %s645_s14  ;;  %p648_p10 = scmp.lt.s32.totalorder %s646_s16, %s640_s18 }
  0x43   : > { %p643_p13 = pneg %p642_p12 }
  0x44   : > { %p649_p2 = por %p648_p10, %p647_p7 }
  0x46   : > { %p650_p4 = pnand %p649_p2, %p643_p13 }
  0xcd   : > { %v252_v7 = vpop.xlane.xlu0 %251 }
  0xce   : > { %v253_v8 = vmul.f32 0.00390625, %v252_v7 }
  0xd0   : > { %545 = vmatpush3.msk.msra.mxu0 %vm247_vm0, %v253_v8 }
  0xd1   : > { %547 = vmatmul.mubr.msk.f32.vlgmr.msra.gmra.mrb[0].mxu0 %vm256_vm2, %v254_v9 }
 0x1a4   : > { %v329_v11 = vpop.f32.mrb[0].mxu0 }
 0x1a5   : > { %v330_v12 = vadd.f32 %v329_v11, %v255_v10  ;;  %v548_v13 = vpop.f32.mrb[1].mxu0 }
 0x1a7   : > { %v333_v14 = vmax.f32 %v330_v12, 0.0 }
 0x1a9   : > { %550 = vmatpush3.msk.msra.mxu1 %vm340_vm3, %v333_v14 }
 0x1aa   : > { %552 = vmatmul.mubr.msk.f32.vlgmr.msra.gmra.mrb[0].mxu1 %vm336_vm4, %v334_v15 }
 0x27d   : > { %v410_v18 = vpop.f32.mrb[0].mxu1 }
 0x27e   : > { %v411_v19 = vadd.f32 %v410_v18, %v335_v17  ;;  %v553_v20 = vpop.f32.mrb[1].mxu1 }
 0x280   : > { %v532_v21 = vmul.f32 -1.442695, %v411_v19 }
 0x282   : > { %606 = vpow2.f32 %v532_v21 }
 0x28c   : > { %v607_v22 = vpop.eup %606 }
 0x28d   : > { %v417_v23 = vadd.f32 1.0, %v607_v22 }
 0x28f   : > { %608 = vrcp.f32 %v417_v23 }
 0x299   : > { %v609_v24 = vpop.eup %608 }
 0x29a   : > { %422 = vperm.xlu0 %604, %v609_v24  }
 0x319   : > { %v423_v31 = vpop.permute.xlu0 %422 }
 0x31a   : > { %v430_v32 = vrot.slane %v423_v31, %v429_v30 }
 0x31c   : > { %v432_v33 = vmul.f32 %v430_v32, %v243_v1 }
 0x31e   : > { %433 = vst [vmem:[%s242_s27] sm:$0xff] %v432_v33 }
 0x31f   : > { %653 = shalt.err (!%p650_p4)
}
 0x320   : > { %s654_s12 = scalar_lea.hbm %s880_s10, 128  ;;  %s658_s15 = scalar_lea.hbm %s929_s5, 256 }
 0x321   : > { %p655_p5 = scmp.ne.s32.totalorder %s880_s10, %s654_s12  ;;  %p659_p0 = scmp.lt.u32.totalorder %s880_s10, %s929_s5 }
 0x322   : > { %p660_p1 = scmp.lt.u32.totalorder %s658_s15, %s654_s12  ;;  %p662_p6 = scmp.lt.u32.totalorder %s654_s12, %s880_s10 }
 0x323   : > { %p656_p8 = pnand %p655_p5, %p938_p11 }
 0x324   : > { %p661_p3 = por %p660_p1, %p659_p0 }
 0x325   : > { %p657_p9 = pneg %p656_p8 }
 0x326   : > { %p663_p12 = por %p662_p6, %p661_p3 }
 0x328   : > { %p664_p13 = pnand %p663_p12, %p657_p9 }
 0x32a   : > { %667 = shalt.err (!%p664_p13)
}
 0x32b   : > { %556 = dma.vmem_to_hbm [thread:$0]  (%p938_p11), %s882_s29, 128, %s880_s10, %s435_s11  }
 0x32c PF: > { %s461_s24 = sand.u32 1, %s694_s20   ;;  %p939_p7 = scmp.ne.s32.totalorder %s934_s7, 0 }
 0x32d   : > { %p940_p10 = scmp.ge.s32.totalorder %s706_s23, 2  ;;  %s462_s26 = scalar_lea.sflag [#allocation5], %s461_s24 }
 0x32f   : > { %p563_p2 = pnand %p940_p10, %p939_p7 }
 0x331   : > { %689 = dma.done.wait (!%p563_p2), %s462_s26, 128  }
 0x332   : > { %691 = vsyncadd (!%p563_p2), %s462_s26, 4294967168  ;;  %p20_p4 = scmp.ge.s32.totalorder %s772_s25, 4   ;;  %s941_s20 = smov %s698_s21 }
 0x333   : > { %s942_s21 = smov %s702_s22  ;;  %s943_s22 = smov %s784_s28 }
 0x334   : > { %s944_s23 = smov %s772_s25  ;;  %22 = sbr.rel (!%p20_p4) target bundleno = 8 (0x8), region = 85 }
 0x33b   :  { %467 = vsyncpa [#allocation4], 1 }
 0x33c   :  { %469 = vsyncpa [#allocation4 + $0x1], 1 }
 0x33d   :  { %470 = vsyncpa [#allocation5], 1 }
 0x33e   :  { %472 = vsyncpa [#allocation5 + $0x1], 1 }

</bundles_post_ra>
